<compile_context>
chip_gen: v6e
topology: v6e:2x2x1
jax: 0.10.0
libtpu: 0.0.40
codegen_flags: <defaults>
</compile_context>

<pallas_src>
import jax
import jax.numpy as jnp
from jax.experimental import pallas as pl
from jax.experimental.pallas import tpu as pltpu


def _round_up(x, m):
    return ((x + m - 1) // m) * m


def _chip_generation():
    """Best-effort TPU generation detection from device_kind."""
    try:
        kind = jax.devices()[0].device_kind.lower()
    except Exception:
        return "unknown"
    if "v5 lite" in kind or "v5e" in kind or "v5lite" in kind:
        return "v5e"
    if "v6" in kind:
        return "v6e"
    if "7" in kind:
        return "v7x"
    if "v5" in kind:
        return "v5p"
    if "v4" in kind:
        return "v4"
    return "unknown"


# Per generation: (max batch tile, scoped VMEM limit bytes, compute dtype,
#                  min grid steps for large batches -> multi-TensorCore use).
# VMEM budget per tile (worst case, f32):
#   x blocks  2 * 32*bm   (8-sublane padded (1,bm), double-buffered)
#   out blocks 2 * 32*bm
#   h1/h2 + temporaries ~128*bm
#   => <= ~256*bm bytes  (16 MiB at bm=65536), comfortably under the limits below.
_CHIP_CONFIG = {
    "v5e":     (32768,  64 * 1024 * 1024, jnp.float32,  1),
    "v6e":     (65536,  96 * 1024 * 1024, jnp.bfloat16, 1),
    "v7x":     (65536,  48 * 1024 * 1024, jnp.bfloat16, 4),
    "v5p":     (65536,  64 * 1024 * 1024, jnp.float32,  1),
    "v4":      (32768,  48 * 1024 * 1024, jnp.float32,  1),
    "unknown": (32768,  None,             jnp.float32,  1),
}


def _make_mlp_kernel(d_h1, d_h2, compute_dtype):
    cd = compute_dtype
    c_w1 = d_h1        # packed-param column offsets
    c_b1 = d_h1 + 1
    c_b2 = d_h1 + 2
    c_w3 = d_h1 + 3
    c_b3 = d_h1 + 4

    def kernel(x_ref, p_ref, o_ref):
        # Transposed layout: features on sublanes, batch on the 128-lane axis.
        x = x_ref[...].astype(cd)                               # (1, bm)

        # Static views into the single packed parameter block.
        w1c = p_ref[0:d_h1, c_w1:c_w1 + 1].astype(cd)           # (d_h1, 1)
        b1c = p_ref[0:d_h1, c_b1:c_b1 + 1].astype(cd)           # (d_h1, 1)
        w2t = p_ref[0:d_h2, 0:d_h1].astype(cd)                  # (d_h2, d_h1)
        b2c = p_ref[0:d_h2, c_b2:c_b2 + 1]                      # (d_h2, 1) f32
        w3c = p_ref[0:d_h2, c_w3:c_w3 + 1].astype(cd)           # (d_h2, 1)
        b3 = p_ref[0:1, c_b3:c_b3 + 1]                          # (1, 1)   f32

        # Layer 1: Linear(1 -> d_h1) + ReLU.  K == 1 -> VPU outer product
        # (no point pushing a K=1 matmul through the MXU).
        h1 = jnp.maximum(w1c * x + b1c, 0.0)                    # (d_h1, bm) cd

        # Layer 2: (Dropout p=0 is identity) Linear(d_h1 -> d_h2) + ReLU.
        # Real MXU matmul, N = bm lane-dense, f32 accumulation.
        h2 = jnp.dot(w2t, h1, preferred_element_type=jnp.float32)
        h2 = jnp.maximum(h2 + b2c, 0.0).astype(cd)              # (d_h2, bm) cd

        # Layer 3: (Dropout identity) Linear(d_h2 -> 1) + Identity output.
        # N == 1 -> VPU multiply + cross-sublane reduce instead of an N=1 matmul.
        out = jnp.sum(w3c * h2, axis=0, keepdims=True)          # (1, bm) cd
        o_ref[...] = (out.astype(jnp.float32) + b3).astype(o_ref.dtype)

    return kernel


def mlp_forward(x, params, *, bm=None, compute_dtype=None):
    """x: (B, 1) float32 -> (B, 1) float32.

    params: w1,b1,w2,b2,w3,b3 in PyTorch-equivalent (in_features, out_features)
    / (1, out_features) layout.
    """
    B, d_in = x.shape
    w1, b1 = params["w1"], params["b1"]   # (1, 10), (1, 10)
    w2, b2 = params["w2"], params["b2"]   # (10, 10), (1, 10)
    w3, b3 = params["w3"], params["b3"]   # (10, 1), (1, 1)
    d_h1, d_h2, d_out = w1.shape[1], w2.shape[1], w3.shape[1]
    assert d_in == 1 and d_out == 1, "kernel specialized to architecture (1, h1, h2, 1)"

    gen = _chip_generation()
    bm_max, vmem_limit, auto_dtype, min_steps = _CHIP_CONFIG.get(
        gen, _CHIP_CONFIG["unknown"])
    if compute_dtype is None:
        compute_dtype = auto_dtype

    # --- batch tile selection -------------------------------------------------
    if bm is not None:
        bm_tile = _round_up(min(bm, _round_up(B, 128)), 128)
    else:
        bm_tile = min(bm_max, _round_up(B, 128))
        # On chips with >1 TensorCore, keep the grid multi-step so both cores
        # get work whenever the batch is large enough to matter.
        if min_steps > 1 and B > min_steps * 1024:
            bm_tile = min(bm_tile, _round_up(pl.cdiv(B, min_steps), 128))
    bm_tile = max(bm_tile, 128)
    grid = (pl.cdiv(B, bm_tile),)

    # --- pack the six tiny parameter tensors into one block --------------------
    R = _round_up(max(d_h1, d_h2), 8)
    C = d_h1 + 5
    packed = jnp.zeros((R, C), jnp.float32)
    packed = packed.at[:d_h2, :d_h1].set(w2.T.astype(jnp.float32))             # W2^T
    packed = packed.at[:d_h1, d_h1 + 0].set(w1.reshape(d_h1).astype(jnp.float32))
    packed = packed.at[:d_h1, d_h1 + 1].set(b1.reshape(d_h1).astype(jnp.float32))
    packed = packed.at[:d_h2, d_h1 + 2].set(b2.reshape(d_h2).astype(jnp.float32))
    packed = packed.at[:d_h2, d_h1 + 3].set(w3.reshape(d_h2).astype(jnp.float32))
    packed = packed.at[0, d_h1 + 4].set(b3.reshape(()).astype(jnp.float32))

    # (B, 1) -> (1, B): pure relayout (one dim is 1), no pad copy; the ragged
    # last block is masked by Pallas inside the kernel.
    xt = x.reshape(1, B).astype(jnp.float32)

    kernel = _make_mlp_kernel(d_h1, d_h2, compute_dtype)

    flops = 2 * B * (d_in * d_h1 + d_h1 * d_h2 + d_h2 * d_out)
    cost = pl.CostEstimate(flops=flops, transcendentals=0,
                           bytes_accessed=4 * B * (d_in + d_out) + 4 * R * C)

    cp_kwargs = dict(dimension_semantics=("parallel",))
    if vmem_limit is not None:
        cp_kwargs["vmem_limit_bytes"] = int(vmem_limit)

    out_t = pl.pallas_call(
        kernel,
        out_shape=jax.ShapeDtypeStruct((d_out, B), jnp.float32),
        grid_spec=pl.GridSpec(
            grid=grid,
            in_specs=[
                pl.BlockSpec((d_in, bm_tile), lambda i: (0, i)),   # x tile, batch on lanes
                pl.BlockSpec((R, C), lambda i: (0, 0)),            # packed params
            ],
            out_specs=pl.BlockSpec((d_out, bm_tile), lambda i: (0, i)),
        ),
        compiler_params=pltpu.CompilerParams(**cp_kwargs),
        cost_estimate=cost,
    )(xt, packed)

    return out_t.reshape(B, d_out)            # (1, B) -> (B, 1), pure relayout


def init_params(key, architecture=(1, 10, 10, 1)):
    """Deterministic init mimicking nn.Linear's uniform(-1/sqrt(fan_in), 1/sqrt(fan_in))."""
    params = {}
    ks = jax.random.split(key, 2 * (len(architecture) - 1))
    for k in range(len(architecture) - 1):
        fan_in, fan_out = architecture[k], architecture[k + 1]
        bound = 1.0 / (fan_in ** 0.5)
        w = jax.random.uniform(ks[2 * k], (fan_in, fan_out), jnp.float32, -bound, bound)
        b = jax.random.uniform(ks[2 * k + 1], (1, fan_out), jnp.float32, -bound, bound)
        params[f"w{k + 1}"] = w
        params[f"b{k + 1}"] = b
    return params


def mlp_reference(x, params):
    h1 = jnp.maximum(x @ params["w1"] + params["b1"], 0.0)
    h2 = jnp.maximum(h1 @ params["w2"] + params["b2"], 0.0)
    return h2 @ params["w3"] + params["b3"]


if __name__ == "__main__":
    key = jax.random.PRNGKey(0)
    k_x, k_p = jax.random.split(key)

    architecture = (1, 10, 10, 1)
    params = init_params(k_p, architecture)

    auto_cd = _CHIP_CONFIG.get(_chip_generation(), _CHIP_CONFIG["unknown"])[2]
    tight = dict(atol=1e-5, rtol=1e-5)
    loose = dict(atol=5e-2, rtol=5e-2)           # bf16-intermediate path
    auto_tol = tight if auto_cd == jnp.float32 else loose

    # Small primary example (single masked partial block, B < 128).
    B = 8
    x = jax.random.normal(k_x, (B, architecture[0]), dtype=jnp.float32)
    ref = mlp_reference(x, params)

    out = jax.block_until_ready(mlp_forward(x, params))               # auto-config path
    assert out.shape == (B, architecture[-1])
    assert jnp.allclose(out, ref, **auto_tol), "mismatch vs reference (B=8, auto)"

    out_f32 = jax.block_until_ready(mlp_forward(x, params, compute_dtype=jnp.float32))
    assert jnp.allclose(out_f32, ref, **tight), "mismatch vs reference (B=8, f32)"

    # Ragged batch (not a multiple of 128) -> masked last block, no wrapper pad.
    B2 = 300
    x2 = jax.random.normal(jax.random.PRNGKey(1), (B2, architecture[0]), dtype=jnp.float32)
    ref2 = mlp_reference(x2, params)
    out2 = jax.block_until_ready(mlp_forward(x2, params, compute_dtype=jnp.float32))
    assert out2.shape == (B2, architecture[-1])
    assert jnp.allclose(out2, ref2, **tight), "mismatch vs reference (B=300)"

    # Multi-step grid with a ragged tail (forces bm < B).
    B3 = 2500
    x3 = jax.random.normal(jax.random.PRNGKey(2), (B3, architecture[0]), dtype=jnp.float32)
    ref3 = mlp_reference(x3, params)
    out3 = jax.block_until_ready(
        mlp_forward(x3, params, bm=256, compute_dtype=jnp.float32))
    assert out3.shape == (B3, architecture[-1])
    assert jnp.allclose(out3, ref3, **tight), "mismatch vs reference (B=2500, bm=256)"

    # Auto-config path (bf16 intermediates on v6e/v7x) on the ragged batch too.
    out3b = jax.block_until_ready(mlp_forward(x3, params))
    assert jnp.allclose(out3b, ref3, **auto_tol), "mismatch vs reference (B=2500, auto)"

    print("KERNEL_OK")
</pallas_src>

<mosaic_0001>
module attributes {stable_mosaic.version = 11 : i64} {
  func.func @kernel(%arg0: i32, %arg1: memref<1x128xf32, #tpu.memory_space<vmem>>, %arg2: memref<16x15xf32, #tpu.memory_space<vmem>>, %arg3: memref<1x128xf32, #tpu.memory_space<vmem>>) attributes {dimension_semantics = [#tpu.dimension_semantics<parallel>], iteration_bounds = array<i64: 1>, scalar_prefetch = 0 : i64, scratch_operands = 0 : i64, tpu.core_type = #tpu.core_type<tc>, window_params = [{transform_indices = @transform_0, window_bounds = array<i64: 1, 128>}, {pipeline_mode = #tpu.pipeline_mode<synchronous>, transform_indices = @transform_1, window_bounds = array<i64: 16, 15>}, {transform_indices = @transform_2, window_bounds = array<i64: 1, 128>}]} {
    %c0 = arith.constant 0 : index
    %c0_0 = arith.constant 0 : index
    %0 = vector.load %arg1[%c0, %c0_0] : memref<1x128xf32, #tpu.memory_space<vmem>>, vector<1x128xf32>
    %c0_1 = arith.constant 0 : index
    %c10 = arith.constant 10 : index
    %1 = vector.load %arg2[%c0_1, %c10] : memref<16x15xf32, #tpu.memory_space<vmem>>, vector<10x1xf32>
    %c0_2 = arith.constant 0 : index
    %c11 = arith.constant 11 : index
    %2 = vector.load %arg2[%c0_2, %c11] : memref<16x15xf32, #tpu.memory_space<vmem>>, vector<10x1xf32>
    %c0_3 = arith.constant 0 : index
    %c0_4 = arith.constant 0 : index
    %3 = vector.load %arg2[%c0_3, %c0_4] : memref<16x15xf32, #tpu.memory_space<vmem>>, vector<10x10xf32>
    %c0_5 = arith.constant 0 : index
    %c12 = arith.constant 12 : index
    %4 = vector.load %arg2[%c0_5, %c12] : memref<16x15xf32, #tpu.memory_space<vmem>>, vector<10x1xf32>
    %c0_6 = arith.constant 0 : index
    %c13 = arith.constant 13 : index
    %5 = vector.load %arg2[%c0_6, %c13] : memref<16x15xf32, #tpu.memory_space<vmem>>, vector<10x1xf32>
    %c0_7 = arith.constant 0 : index
    %c14 = arith.constant 14 : index
    %6 = vector.load %arg2[%c0_7, %c14] : memref<16x15xf32, #tpu.memory_space<vmem>>, vector<1x1xf32>
    %7 = vector.broadcast %1 : vector<10x1xf32> to vector<10x128xf32>
    %8 = vector.broadcast %0 : vector<1x128xf32> to vector<10x128xf32>
    %9 = arith.mulf %7, %8 : vector<10x128xf32>
    %10 = vector.broadcast %2 : vector<10x1xf32> to vector<10x128xf32>
    %11 = arith.addf %9, %10 : vector<10x128xf32>
    %cst = arith.constant 0.000000e+00 : f32
    %12 = vector.broadcast %cst : f32 to vector<10x128xf32>
    %13 = arith.maximumf %11, %12 : vector<10x128xf32>
    %cst_8 = arith.constant dense<0.000000e+00> : vector<10x128xf32>
    %14 = tpu.matmul %3, %13, %cst_8 {dimension_numbers = #tpu.dot_dimension_numbers<[1], [0], [0], [1], [0, 0, 1, 1], [], []>} : vector<10x10xf32>, vector<10x128xf32>, vector<10x128xf32> -> vector<10x128xf32>
    %15 = vector.broadcast %4 : vector<10x1xf32> to vector<10x128xf32>
    %16 = arith.addf %14, %15 : vector<10x128xf32>
    %cst_9 = arith.constant 0.000000e+00 : f32
    %17 = vector.broadcast %cst_9 : f32 to vector<10x128xf32>
    %18 = arith.maximumf %16, %17 : vector<10x128xf32>
    %19 = vector.broadcast %5 : vector<10x1xf32> to vector<10x128xf32>
    %20 = arith.mulf %19, %18 : vector<10x128xf32>
    %cst_10 = arith.constant dense<0.000000e+00> : vector<128xf32>
    %21 = vector.multi_reduction <add>, %20, %cst_10 [0] : vector<10x128xf32> to vector<128xf32>
    %22 = vector.shape_cast %21 : vector<128xf32> to vector<1x128xf32>
    %23 = vector.broadcast %6 : vector<1x1xf32> to vector<1x128xf32>
    %24 = arith.addf %22, %23 : vector<1x128xf32>
    %c0_11 = arith.constant 0 : index
    %c0_12 = arith.constant 0 : index
    %25 = vector.load %arg3[%c0_11, %c0_12] : memref<1x128xf32, #tpu.memory_space<vmem>>, vector<1x128xf32>
    tpu.vector_store %arg3[%c0_11, %c0_12], %24 {strides = array<i32>} : memref<1x128xf32, #tpu.memory_space<vmem>>, vector<1x128xf32>,
    return
  }
  func.func @transform_0(%arg0: i32) -> (i32, i32) {
    %c0_i32 = arith.constant 0 : i32
    %c0_i32_0 = arith.constant 0 : i32
    return %c0_i32, %arg0 : i32, i32
  }
  func.func @transform_1(%arg0: i32) -> (i32, i32) {
    %c0_i32 = arith.constant 0 : i32
    %c0_i32_0 = arith.constant 0 : i32
    %c0_i32_1 = arith.constant 0 : i32
    return %c0_i32, %c0_i32_0 : i32, i32
  }
  func.func @transform_2(%arg0: i32) -> (i32, i32) {
    %c0_i32 = arith.constant 0 : i32
    %c0_i32_0 = arith.constant 0 : i32
    return %c0_i32, %arg0 : i32, i32
  }
}

</mosaic_0001>

<bundles_post_ra>
// kernel: tpu_custom_call.1
= control target key start
LH: loop header
LB: loop body
LE: loop exit
PB: predicated region body
PF: predicated region fallthrough
CT: control target
= control target key end

     0   :  { %7 = vsyncpa [#allocation3], 0  ;;  %s345_s0 = inlined_call_operand.hbm [shape: f32[1,8], index: 0, kind: input, shape index: {}]   ;;  %s346_s1 = inlined_call_operand.hbm [shape: f32[16,15], index: 1, kind: input, shape index: {}]   ;;  %s347_s2 = inlined_call_operand.hbm [shape: f32[1,8], index: 2, kind: output, shape index: {}]  }
   0x1   :  { %8 = vsyncpa [#allocation6], 0 }
   0x2   :  { %9 = vsyncpa [#allocation4], 0  ;;  %s306_s9 = smov [#allocation2]   ;;  %s307_s11 = smov [#allocation5]  }
   0x3   :  { %s16_s10 = sshll.u32 %s306_s9, 4  ;;  %s25_s12 = sshll.u32 %s307_s11, 4  ;;  %s17_s10 = int_to_ptr.vmem [resolvable:$true] %s16_s10  ;;  %s26_s12 = int_to_ptr.vmem [resolvable:$true] %s25_s12 }
   0x4   :  { %s248_s13 = scalar_lea.vmem %s17_s10, 16  ;;  %s252_s14 = scalar_lea.vmem %s17_s10, 32 }
   0x5   :  { %p249_p0 = scmp.ne.s32.totalorder %s17_s10, %s248_s13  ;;  %p253_p1 = scmp.lt.s32.totalorder %s17_s10, %s17_s10 }
   0x6   :  { %p254_p2 = scmp.lt.s32.totalorder %s252_s14, %s248_s13 }
   0x8   :  { %p255_p3 = por %p254_p2, %p253_p1 }
   0xa   :  { %p256_p4 = pnand %p255_p3, %p249_p0 }
   0xc   :  { %259 = shalt.err (!%p256_p4)
}
   0xd   :  { %19 = dma.hbm_to_vmem [thread:$0]  %s345_s0, 16, %s17_s10, [#allocation3]  }
   0xe   :  { %s268_s17 = scalar_lea.vmem %s26_s12, 256  ;;  %p273_p6 = scmp.lt.s32.totalorder %s26_s12, %s26_s12 }
   0xf   :  { %p269_p5 = scmp.ne.s32.totalorder %s26_s12, %s268_s17  ;;  %p274_p7 = scmp.lt.s32.totalorder %s268_s17, %s268_s17 }
  0x11   :  { %p275_p8 = por %p274_p7, %p273_p6 }
  0x13   :  { %p276_p9 = pnand %p275_p8, %p269_p5 }
  0x15   :  { %279 = shalt.err (!%p276_p9)
}
  0x16   :  { %s308_s18 = smov 128   ;;  %s309_s19 = smov 8  }
  0x17   :  { %31 = dma.hbm_to_vmem [thread:$0]  %s346_s1, 256, %s26_s12, [#allocation6], %s308_s18, %s308_s18, %s309_s19  }
  0x18   :  { %300 = dma.done.wait [#allocation3], 16  }
  0x19   :  { %301 = vsyncadd [#allocation3], 4294967280 }
  0x1a   :  { %302 = dma.done.wait [#allocation6], 256  }
  0x1b   :  { %303 = vsyncadd [#allocation6], 4294967040  ;;  %v310_v0 = vmov 11   ;;  %v311_v1 = vmov 10   ;;  %v40_v2 = vld [vmem:[#allocation5 + $0x8] sm:$0x3] }
  0x1c   :  { %233 = vset.pattern.permute.xlu1 %v310_v0  ;;  %232 = vset.pattern.permute.xlu0 %v311_v1  ;;  %v39_v3 = vld [vmem:[#allocation5] sm:$0xff]  ;;  %vm80_vm0 = vcmask 80896   ;;  %v312_v4 = vmov 12   ;;  %v313_v5 = vmov 13   ;;  %v314_v7 = vmov 14   ;;  %s315_s0 = smov [#allocation7]  }
  0x1d   :  { %65 = vperm.xlu1 %233, %v40_v2   ;;  %49 = vperm.xlu0 %232, %v40_v2   ;;  %v41_v6 = vld [vmem:[#allocation5] sm:$0x1]  ;;  %v207_v8 = vld [vmem:[#allocation2] ss:$0 sm:$0xff]  ;;  %vm85_vm1 = vcmask 1041408   ;;  %s197_s1 = sshll.u32 %s315_s0, 4  ;;  %s198_s1 = int_to_ptr.vmem [resolvable:$true] %s197_s1 }
  0x1e   :  { %219 = vmatprep.mubr.msk.f32.mxu0 %vm80_vm0, %v39_v3  ;;  %s280_s22 = scalar_lea.vmem %s198_s1, 16  ;;  %s284_s23 = scalar_lea.vmem %s198_s1, 32 }
  0x1f   :  { %p281_p10 = scmp.ne.s32.totalorder %s198_s1, %s280_s22  ;;  %p285_p11 = scmp.lt.s32.totalorder %s198_s1, %s198_s1 }
  0x20   :  { %p286_p12 = scmp.lt.s32.totalorder %s284_s23, %s280_s22 }
  0x21   :  { %61 = vperm.xlu1 %233, %v39_v3   ;;  %44 = vperm.xlu0 %232, %v39_v3  }
  0x22   :  { %p287_p13 = por %p286_p12, %p285_p11 }
  0x24   :  { %p288_p0 = pnand %p287_p13, %p281_p10 }
  0x25   :  { %235 = vset.pattern.permute.xlu1 %v312_v4  ;;  %234 = vset.pattern.permute.xlu0 %v312_v4 }
  0x26   :  { %73 = vperm.xlu1 %235, %v39_v3   ;;  %77 = vperm.xlu0 %234, %v40_v2  }
  0x2a   :  { %236 = vset.pattern.permute.xlu1 %v313_v5  ;;  %237 = vset.pattern.permute.xlu0 %v313_v5 }
  0x2b   :  { %171 = vperm.xlu1 %236, %v40_v2   ;;  %167 = vperm.xlu0 %237, %v39_v3  }
  0x2f   :  { %238 = vset.pattern.permute.xlu1 %v314_v7  ;;  %239 = vset.pattern.permute.xlu0 %v314_v7 }
  0x30   :  { %186 = vperm.xlu1 %238, %v41_v6  }
  0x98   :  { %v66_v9 = vpop.permute.xlu1 %65  ;;  %v50_v10 = vpop.permute.xlu0 %49 }
  0x99   :  { %v59_v11 = vmul.f32 %v207_v8, %v50_v10 }
  0x9b   :  { %v69_v12 = vadd.f32 %v66_v9, %v59_v11 }
  0x9c   :  { %v45_v13 = vpop.permute.xlu0 %44  ;;  %v62_v16 = vpop.permute.xlu1 %61 }
  0x9d   :  { %v58_v14 = vmul.f32 %v207_v8, %v45_v13  ;;  %v71_v15 = vmax.f32 %v69_v12, 0.0 }
  0x9f   :  { %v68_v17 = vadd.f32 %v62_v16, %v58_v14  ;;  %215 = vmatprep.subr.msk.mxu0 %vm85_vm1, %v71_v15 }
  0xa0   :  { %216 = vmatpush3.msk.msra.mxu0 %vm85_vm1, %v71_v15 }
  0xa1   :  { %v70_v18 = vmax.f32 %v68_v17, 0.0  ;;  %v74_v19 = vpop.permute.xlu1 %73  ;;  %v78_v20 = vpop.permute.xlu0 %77 }
  0xa3   :  { %217 = vmatprep.subr.mxu0 %v70_v18 }
  0xa4   :  { %218 = vmatpush3.msra.mxu0 %v70_v18 }
  0xa5   :  { %220 = vmatmul.mubr.msk.f32.vlgmr.msra.gmra.mxu0 %vm80_vm0, %v40_v2 }
  0xa6   :  { %v172_v24 = vpop.permute.xlu1 %171  ;;  %v168_v27 = vpop.permute.xlu0 %167 }
  0xab   :  { %v187_v38 = vpop.permute.xlu1 %186 }
 0x165   :  { %v221_v21 = vpop.f32.mrf.mxu0 }
 0x166   :  { %v161_v22 = vadd.f32 %v221_v21, %v78_v20 }
 0x167   :  { %v155_v23 = vpop.f32.mrf.mxu0 }
 0x168   :  { %v165_v25 = vmax.f32 %v161_v22, 0.0  ;;  %v156_v26 = vadd.f32 %v155_v23, %v74_v19 }
 0x16a   :  { %v164_v28 = vmax.f32 %v156_v26, 0.0  ;;  %v175_v29 = vmul.f32 %v172_v24, %v165_v25 }
 0x16c   :  { %v176_v30 = vsel %vm85_vm1, %v175_v29, 0.0  ;;  %v174_v31 = vmul.f32 %v168_v27, %v164_v28 }
 0x16e   :  { %v177_v32 = vadd.f32 %v176_v30, %v174_v31 }
 0x170   :  { %v178_v33 = vrot.slane %v177_v32, 4 }
 0x172   :  { %v179_v34 = vadd.f32 %v178_v33, %v177_v32 }
 0x174   :  { %v180_v35 = vrot.slane %v179_v34, 2 }
 0x176   :  { %v181_v36 = vadd.f32 %v180_v35, %v179_v34 }
 0x178   :  { %v182_v37 = vrot.slane %v181_v36, 1 }
 0x17a   :  { %v183_v39 = vadd.f32 %v182_v37, %v181_v36 }
 0x17c   :  { %v189_v40 = vadd.f32 %v187_v38, %v183_v39 }
 0x17e   :  { %190 = vst [vmem:[#allocation7] sm:$0x1] %v189_v40 }
 0x17f   :  { %291 = shalt.err (!%p288_p0)
}
 0x180   :  { %200 = dma.vmem_to_hbm [thread:$0]  %s198_s1, 16, %s347_s2, [#allocation4]  }
 0x181   :  { %304 = dma.done.wait [#allocation4], 16  }
 0x182   :  { %305 = vsyncadd [#allocation4], 4294967280 }
 0x183   :  { %204 = vsyncpa [#allocation3], 1 }
 0x184   :  { %205 = vsyncpa [#allocation6], 1 }
 0x185   :  { %206 = vsyncpa [#allocation4], 1 }

</bundles_post_ra>
